<compile_context>
chip_gen: v6e
topology: v6e:2x2x1
jax: 0.10.0
libtpu: 0.0.40
codegen_flags: <defaults>
</compile_context>

<pallas_src>
import functools

import numpy as np

import jax
import jax.numpy as jnp
from jax.experimental import pallas as pl
from jax.experimental.pallas import tpu as pltpu


def _round_up(x: int, m: int) -> int:
    return (x + m - 1) // m * m


def _choose_tile_s(seq_len: int, max_tile_s: int) -> int:
    """Output-row tile size: as large as allowed; when tiled, aim for an even
    tile count so the 'parallel' grid axis balances v7x's two TensorCores."""
    if seq_len <= max_tile_s:
        return seq_len                      # single full-size block
    max_tile_s = max(8, (max_tile_s // 8) * 8)
    num_tiles = -(-seq_len // max_tile_s)
    if num_tiles % 2:
        num_tiles += 1
    tile = _round_up(-(-seq_len // num_tiles), 8)
    return min(tile, max_tile_s)


# --------------------------------------------------------------------------
# Interpolation path: seq_len != num_embeddings
# --------------------------------------------------------------------------
def _interp_kernel(start_ref, col0_ref, col1_ref, w0_ref, w1_ref, pe_ref, o_ref,
                   *, in_tile: int):
    # start_ref : SMEM (num_tiles,) int32   8-aligned pe-row window start
    # col*_ref  : VMEM (1, tile_s, 1) int32 2-tap column offsets inside window
    # w*_ref    : VMEM (1, tile_s, 1) f32   2-tap weights (padding_idx folded in)
    # pe_ref    : VMEM (n_pad, d_pad)       whole table, resident across grid
    # o_ref     : VMEM (tile_s, d_pad)
    tile_s = o_ref.shape[0]

    # Rebuild the sparse 2-tap interpolation matrix on the VPU (free filler
    # under the pe/output DMA) instead of streaming a dense weight slab.
    col = jax.lax.broadcasted_iota(jnp.int32, (tile_s, in_tile), 1)
    w = (jnp.where(col == col0_ref[0], w0_ref[0], 0.0)
         + jnp.where(col == col1_ref[0], w1_ref[0], 0.0))

    start = pl.multiple_of(start_ref[pl.program_id(0)], 8)
    window = pe_ref[pl.ds(start, in_tile), :]
    o_ref[...] = jnp.dot(w, window,
                         preferred_element_type=jnp.float32).astype(o_ref.dtype)


def _build_interp_plan(n: int, s: int, padding_idx, tile_s: int):
    """All-static (numpy, trace-time) plan matching F.interpolate(
    mode='bilinear', align_corners=False) along the sequence axis."""
    num_tiles = -(-s // tile_s)
    s_pad = num_tiles * tile_s
    n_pad = _round_up(n, 8)

    idx = np.arange(s_pad, dtype=np.float64)
    valid = idx < s
    idx = np.minimum(idx, s - 1)
    src = np.maximum((idx + 0.5) * (float(n) / float(s)) - 0.5, 0.0)
    i0 = np.minimum(np.floor(src), n - 1).astype(np.int64)
    lam = (src - i0).astype(np.float32)
    i1 = np.minimum(i0 + 1, n - 1)

    # Per-tile 8-aligned window start + one fixed window size (in_tile).
    lo = i0.reshape(num_tiles, tile_s).min(axis=1)
    hi = i1.reshape(num_tiles, tile_s).max(axis=1)
    start = (lo // 8) * 8
    span = hi - start + 1
    in_tile = min(_round_up(int(span.max()), 8), n_pad)
    start = np.minimum(start, n_pad - in_tile).astype(np.int32)

    win_start = np.repeat(start.astype(np.int64), tile_s)
    col0 = (i0 - win_start).astype(np.int32)
    col1 = (i1 - win_start).astype(np.int32)
    w0 = (1.0 - lam).astype(np.float32)
    w1 = lam.astype(np.float32)
    if padding_idx is not None:                 # fold the row-zeroing into weights
        w0 = np.where(i0 == padding_idx, 0.0, w0).astype(np.float32)
        w1 = np.where(i1 == padding_idx, 0.0, w1).astype(np.float32)
    # Padded rows produce zeros; Pallas masks the partial last-block writeback.
    w0 = np.where(valid, w0, 0.0).astype(np.float32)
    w1 = np.where(valid, w1, 0.0).astype(np.float32)

    assert col0.min() >= 0 and col1.min() >= 0
    assert col0.max() < in_tile and col1.max() < in_tile

    rs = lambda a: a.reshape(num_tiles, tile_s, 1)
    return num_tiles, in_tile, n_pad, start, rs(col0), rs(col1), rs(w0), rs(w1)


def _forward_interp(pe2d: jax.Array, seq_len: int, padding_idx, max_tile_s: int):
    n, d = pe2d.shape
    tile_s = _choose_tile_s(seq_len, max_tile_s)
    (num_tiles, in_tile, n_pad, start_np,
     col0_np, col1_np, w0_np, w1_np) = _build_interp_plan(n, seq_len, padding_idx, tile_s)

    d_pad = _round_up(d, 128)                   # lane-dense output stores
    pe = pe2d
    if n_pad != n or d_pad != d:
        pe = jnp.pad(pe2d, ((0, n_pad - n), (0, d_pad - d)))

    kernel = functools.partial(_interp_kernel, in_tile=in_tile)
    grid_spec = pltpu.PrefetchScalarGridSpec(
        num_scalar_prefetch=1,
        grid=(num_tiles,),
        in_specs=[
            pl.BlockSpec((1, tile_s, 1), lambda t, s_ref: (t, 0, 0)),       # col0
            pl.BlockSpec((1, tile_s, 1), lambda t, s_ref: (t, 0, 0)),       # col1
            pl.BlockSpec((1, tile_s, 1), lambda t, s_ref: (t, 0, 0)),       # w0
            pl.BlockSpec((1, tile_s, 1), lambda t, s_ref: (t, 0, 0)),       # w1
            pl.BlockSpec((n_pad, d_pad), lambda t, s_ref: (0, 0)),          # pe (resident)
        ],
        out_specs=pl.BlockSpec((tile_s, d_pad), lambda t, s_ref: (t, 0)),
    )

    out = pl.pallas_call(
        kernel,
        out_shape=jax.ShapeDtypeStruct((seq_len, d_pad), pe2d.dtype),
        grid_spec=grid_spec,
        compiler_params=pltpu.CompilerParams(dimension_semantics=("parallel",)),
    )(
        jnp.asarray(start_np),
        jnp.asarray(col0_np), jnp.asarray(col1_np),
        jnp.asarray(w0_np), jnp.asarray(w1_np),
        pe,
    )
    if d_pad != d:
        out = out[:, :d]
    return out


# --------------------------------------------------------------------------
# Public wrapper
# --------------------------------------------------------------------------
def learnable_positional_embedding_forward(
    pos_embed: jax.Array,        # (1, 1, num_embeddings, embedding_dim)
    seq_len: int,
    *,
    padding_idx=None,
    sequence_first: bool = False,
    max_tile_s: int = 512,
):
    _, _, num_embeddings, embedding_dim = pos_embed.shape
    pe2d = pos_embed.reshape(num_embeddings, embedding_dim)

    if seq_len == num_embeddings:
        # Fast path: interpolation is the identity.  Per review, no Pallas copy
        # kernel (it would be a pure HBM round-trip); just zero the padding row.
        out2d = pe2d if padding_idx is None else pe2d.at[padding_idx].set(0.0)
    else:
        out2d = _forward_interp(pe2d, seq_len, padding_idx, max_tile_s)

    if sequence_first:
        return out2d.reshape(seq_len, 1, embedding_dim)
    return out2d.reshape(1, seq_len, embedding_dim)


# --------------------------------------------------------------------------
# Plain-JAX reference (same math) for sanity checks
# --------------------------------------------------------------------------
def _reference(pos_embed, seq_len, padding_idx=None):
    n_in = pos_embed.shape[2]
    d = pos_embed.shape[3]
    pe = pos_embed.reshape(n_in, d).astype(jnp.float32)
    if padding_idx is not None:
        pe = pe.at[padding_idx].set(0.0)
    if seq_len == n_in:
        return pe.reshape(1, seq_len, d)
    i = jnp.arange(seq_len, dtype=jnp.float32)
    src = jnp.maximum((i + 0.5) * (n_in / seq_len) - 0.5, 0.0)
    i0 = jnp.floor(src)
    lam = (src - i0)[:, None]
    i0i = i0.astype(jnp.int32)
    i1i = jnp.minimum(i0i + 1, n_in - 1)
    out = (1.0 - lam) * pe[i0i] + lam * pe[i1i]
    return out.reshape(1, seq_len, d)


if __name__ == "__main__":
    key = jax.random.PRNGKey(0)

    num_embeddings = 16
    embedding_dim = 32
    padding_idx = 0

    # Deterministic init mimicking trunc_normal_(std=embedding_dim**-0.5).
    std = embedding_dim ** (-0.5)
    pos_embed = (
        jax.random.truncated_normal(
            key, -2.0, 2.0, (1, 1, num_embeddings, embedding_dim), jnp.float32
        )
        * std
    )

    # 1) Downsample (seq_len < num_embeddings) with padding_idx -> Pallas kernel.
    out = learnable_positional_embedding_forward(pos_embed, 8, padding_idx=padding_idx)
    out = jax.block_until_ready(out)
    assert out.shape == (1, 8, embedding_dim), out.shape
    ref = _reference(pos_embed, 8, padding_idx=padding_idx)
    assert jnp.allclose(out, ref, atol=1e-4, rtol=1e-4)

    # 2) seq_len == num_embeddings fast path (no kernel: reshape + row zero).
    out_same = jax.block_until_ready(
        learnable_positional_embedding_forward(
            pos_embed, num_embeddings, padding_idx=padding_idx
        )
    )
    ref_same = _reference(pos_embed, num_embeddings, padding_idx=padding_idx)
    assert jnp.allclose(out_same, ref_same, atol=1e-5, rtol=1e-5)

    # 3) Upsample, no padding, sequence_first layout.
    out_sf = jax.block_until_ready(
        learnable_positional_embedding_forward(pos_embed, 24, sequence_first=True)
    )
    assert out_sf.shape == (24, 1, embedding_dim), out_sf.shape
    ref_sf = _reference(pos_embed, 24).reshape(24, 1, embedding_dim)
    assert jnp.allclose(out_sf, ref_sf, atol=1e-4, rtol=1e-4)

    # 4) Multi-tile grid with a partial last output block (seq_len % tile_s != 0),
    #    exercising the masked partial-block writeback flagged in review.
    out_mt = jax.block_until_ready(
        learnable_positional_embedding_forward(
            pos_embed, 20, padding_idx=padding_idx, max_tile_s=8
        )
    )
    ref_mt = _reference(pos_embed, 20, padding_idx=padding_idx)
    assert jnp.allclose(out_mt, ref_mt, atol=1e-4, rtol=1e-4)

    print("KERNEL_OK")
</pallas_src>

<mosaic_0001>
module attributes {stable_mosaic.version = 11 : i64} {
  func.func @_interp_kernel(%arg0: i32, %arg1: memref<1xi32, #tpu.memory_space<smem>>, %arg2: memref<1x8x1xi32, #tpu.memory_space<vmem>>, %arg3: memref<1x8x1xi32, #tpu.memory_space<vmem>>, %arg4: memref<1x8x1xf32, #tpu.memory_space<vmem>>, %arg5: memref<1x8x1xf32, #tpu.memory_space<vmem>>, %arg6: memref<16x128xf32, #tpu.memory_space<vmem>>, %arg7: memref<8x128xf32, #tpu.memory_space<vmem>>) attributes {dimension_semantics = [#tpu.dimension_semantics<parallel>], iteration_bounds = array<i64: 1>, scalar_prefetch = 1 : i64, scratch_operands = 0 : i64, tpu.core_type = #tpu.core_type<tc>, window_params = [{transform_indices = @transform_0, window_bounds = array<i64: 1, 8, 1>}, {transform_indices = @transform_1, window_bounds = array<i64: 1, 8, 1>}, {transform_indices = @transform_2, window_bounds = array<i64: 1, 8, 1>}, {transform_indices = @transform_3, window_bounds = array<i64: 1, 8, 1>}, {pipeline_mode = #tpu.pipeline_mode<synchronous>, transform_indices = @transform_4, window_bounds = array<i64: 16, 128>}, {transform_indices = @transform_5, window_bounds = array<i64: 8, 128>}]} {
    %0 = tpu.iota {dimensions = array<i32: 1>} : vector<8x16xi32>
    %c0 = arith.constant 0 : index
    %c0_0 = arith.constant 0 : index
    %c0_1 = arith.constant 0 : index
    %1 = vector.load %arg2[%c0, %c0_0, %c0_1] : memref<1x8x1xi32, #tpu.memory_space<vmem>>, vector<1x8x1xi32>
    %2 = vector.shape_cast %1 : vector<1x8x1xi32> to vector<8x1xi32>
    %3 = vector.broadcast %2 : vector<8x1xi32> to vector<8x16xi32>
    %4 = arith.cmpi eq, %0, %3 : vector<8x16xi32>
    %c0_2 = arith.constant 0 : index
    %c0_3 = arith.constant 0 : index
    %c0_4 = arith.constant 0 : index
    %5 = vector.load %arg4[%c0_2, %c0_3, %c0_4] : memref<1x8x1xf32, #tpu.memory_space<vmem>>, vector<1x8x1xf32>
    %6 = vector.shape_cast %5 : vector<1x8x1xf32> to vector<8x1xf32>
    %cst = arith.constant 0.000000e+00 : f32
    %7 = vector.shape_cast %6 : vector<8x1xf32> to vector<8x1xf32>
    %8 = vector.broadcast %7 : vector<8x1xf32> to vector<8x16xf32>
    %9 = vector.broadcast %cst : f32 to vector<8x16xf32>
    %10 = arith.select %4, %8, %9 : vector<8x16xi1>, vector<8x16xf32>
    %c0_5 = arith.constant 0 : index
    %c0_6 = arith.constant 0 : index
    %c0_7 = arith.constant 0 : index
    %11 = vector.load %arg3[%c0_5, %c0_6, %c0_7] : memref<1x8x1xi32, #tpu.memory_space<vmem>>, vector<1x8x1xi32>
    %12 = vector.shape_cast %11 : vector<1x8x1xi32> to vector<8x1xi32>
    %13 = vector.broadcast %12 : vector<8x1xi32> to vector<8x16xi32>
    %14 = arith.cmpi eq, %0, %13 : vector<8x16xi32>
    %c0_8 = arith.constant 0 : index
    %c0_9 = arith.constant 0 : index
    %c0_10 = arith.constant 0 : index
    %15 = vector.load %arg5[%c0_8, %c0_9, %c0_10] : memref<1x8x1xf32, #tpu.memory_space<vmem>>, vector<1x8x1xf32>
    %16 = vector.shape_cast %15 : vector<1x8x1xf32> to vector<8x1xf32>
    %cst_11 = arith.constant 0.000000e+00 : f32
    %17 = vector.shape_cast %16 : vector<8x1xf32> to vector<8x1xf32>
    %18 = vector.broadcast %17 : vector<8x1xf32> to vector<8x16xf32>
    %19 = vector.broadcast %cst_11 : f32 to vector<8x16xf32>
    %20 = arith.select %14, %18, %19 : vector<8x16xi1>, vector<8x16xf32>
    %21 = arith.addf %10, %20 : vector<8x16xf32>
    %22 = arith.index_cast %arg0 : i32 to index
    %23 = memref.load %arg1[%22] : memref<1xi32, #tpu.memory_space<smem>>
    %24 = tpu.assume_multiple %23, 8 : i32
    %25 = arith.index_cast %24 : i32 to index
    %c0_12 = arith.constant 0 : index
    %26 = vector.load %arg6[%25, %c0_12] : memref<16x128xf32, #tpu.memory_space<vmem>>, vector<16x128xf32>
    %cst_13 = arith.constant dense<0.000000e+00> : vector<8x128xf32>
    %27 = tpu.matmul %21, %26, %cst_13 {dimension_numbers = #tpu.dot_dimension_numbers<[1], [0], [0], [1], [0, 0, 1, 1], [], []>} : vector<8x16xf32>, vector<16x128xf32>, vector<8x128xf32> -> vector<8x128xf32>
    %c0_14 = arith.constant 0 : index
    %c0_15 = arith.constant 0 : index
    %28 = vector.load %arg7[%c0_14, %c0_15] : memref<8x128xf32, #tpu.memory_space<vmem>>, vector<8x128xf32>
    tpu.vector_store %arg7[%c0_14, %c0_15], %27 {strides = array<i32>} : memref<8x128xf32, #tpu.memory_space<vmem>>, vector<8x128xf32>,
    return
  }
  func.func @transform_0(%arg0: i32, %arg1: memref<1xi32, #tpu.memory_space<smem>>) -> (i32, i32, i32) {
    %c0_i32 = arith.constant 0 : i32
    %c0_i32_0 = arith.constant 0 : i32
    %c0_i32_1 = arith.constant 0 : i32
    return %arg0, %c0_i32, %c0_i32_0 : i32, i32, i32
  }
  func.func @transform_1(%arg0: i32, %arg1: memref<1xi32, #tpu.memory_space<smem>>) -> (i32, i32, i32) {
    %c0_i32 = arith.constant 0 : i32
    %c0_i32_0 = arith.constant 0 : i32
    %c0_i32_1 = arith.constant 0 : i32
    return %arg0, %c0_i32, %c0_i32_0 : i32, i32, i32
  }
  func.func @transform_2(%arg0: i32, %arg1: memref<1xi32, #tpu.memory_space<smem>>) -> (i32, i32, i32) {
    %c0_i32 = arith.constant 0 : i32
    %c0_i32_0 = arith.constant 0 : i32
    %c0_i32_1 = arith.constant 0 : i32
    return %arg0, %c0_i32, %c0_i32_0 : i32, i32, i32
  }
  func.func @transform_3(%arg0: i32, %arg1: memref<1xi32, #tpu.memory_space<smem>>) -> (i32, i32, i32) {
    %c0_i32 = arith.constant 0 : i32
    %c0_i32_0 = arith.constant 0 : i32
    %c0_i32_1 = arith.constant 0 : i32
    return %arg0, %c0_i32, %c0_i32_0 : i32, i32, i32
  }
  func.func @transform_4(%arg0: i32, %arg1: memref<1xi32, #tpu.memory_space<smem>>) -> (i32, i32) {
    %c0_i32 = arith.constant 0 : i32
    %c0_i32_0 = arith.constant 0 : i32
    %c0_i32_1 = arith.constant 0 : i32
    return %c0_i32, %c0_i32_0 : i32, i32
  }
  func.func @transform_5(%arg0: i32, %arg1: memref<1xi32, #tpu.memory_space<smem>>) -> (i32, i32) {
    %c0_i32 = arith.constant 0 : i32
    %c0_i32_0 = arith.constant 0 : i32
    return %arg0, %c0_i32 : i32, i32
  }
}

</mosaic_0001>

<bundles_post_ra>
// kernel: tpu_custom_call.1
= control target key start
LH: loop header
LB: loop body
LE: loop exit
PB: predicated region body
PF: predicated region fallthrough
CT: control target
= control target key end

     0   :  { %v183_v2 = vmov 0   ;;  %s243_s0 = inlined_call_operand.<no memory space> [shape: s32[1], index: 0, kind: input, shape index: {}]   ;;  %s244_s1 = inlined_call_operand.vmem [shape: s32[1,8,1], index: 1, kind: input, shape index: {}]   ;;  %s245_s2 = inlined_call_operand.vmem [shape: s32[1,8,1], index: 2, kind: input, shape index: {}]   ;;  %s246_s3 = inlined_call_operand.vmem [shape: f32[1,8,1], index: 3, kind: input, shape index: {}]   ;;  %s247_s4 = inlined_call_operand.vmem [shape: f32[1,8,1], index: 4, kind: input, shape index: {}]   ;;  %s248_s5 = inlined_call_operand.vmem [shape: f32[16,128], index: 5, kind: input, shape index: {}]   ;;  %s249_s6 = inlined_call_operand.hbm [shape: f32[8,128], index: 6, kind: output, shape index: {}]  }
   0x1   :  { %v30_v0 = vld [vmem:[%s246_s3] sm:$0xff]  ;;  %160 = vset.pattern.permute.xlu1 %v183_v2  ;;  %159 = vset.pattern.permute.xlu0 %v183_v2  ;;  %s51_s29 = scalar_lea.vmem %s248_s5, %s243_s0 }
   0x2   :  { %v25_v1 = vld [vmem:[%s244_s1] sm:$0xff] }
   0x3   :  { %12 = vsyncpa [#allocation5], 0  ;;  %33 = vperm.xlu1 %160, %v30_v0   ;;  %27 = vperm.xlu0 %159, %v25_v1   ;;  %v53_v3 = vld [vmem:[%s51_s29 + $0x8] sm:$0xff]  ;;  %v42_v4 = vld [vmem:[%s247_s4] sm:$0xff]  ;;  %v184_v6 = vmov 0.0   ;;  %vm185_vm0 = vmmov 0   ;;  %v23_v8 = vlaneseq }
   0x4   :  { %v37_v5 = vld [vmem:[%s245_s2] sm:$0xff]  ;;  %148 = vmatprep.subr.mxu0 %v184_v6  ;;  %152 = vmatprep.mubr.msk.f32.mxu0 %vm185_vm0, %v184_v6  ;;  %vm54_vm3 = vcmask 130048   ;;  %s186_s0 = smov [#allocation4]  }
   0x5   :  { %149 = vmatpush3.msra.mxu0 %v53_v3  ;;  %v52_v7 = vld [vmem:[%s51_s29] sm:$0xff]  ;;  %v24_v9 = vand.u32 127, %v23_v8  ;;  %s135_s2 = sshll.u32 %s186_s0, 4  ;;  %s136_s2 = int_to_ptr.vmem [resolvable:$true] %s135_s2 }
   0x6   :  { %150 = vmatprep.subr.mxu0 %v184_v6  ;;  %s161_s4 = scalar_lea.vmem %s136_s2, 128  ;;  %p166_p1 = scmp.lt.s32.totalorder %s136_s2, %s136_s2 }
   0x7   :  { %45 = vperm.xlu1 %160, %v42_v4   ;;  %39 = vperm.xlu0 %159, %v37_v5   ;;  %p162_p0 = scmp.ne.s32.totalorder %s136_s2, %s161_s4  ;;  %p167_p2 = scmp.lt.s32.totalorder %s161_s4, %s161_s4 }
   0x8   :  { %151 = vmatpush3.msra.mxu0 %v52_v7 }
   0x9   :  { %p168_p3 = por %p167_p2, %p166_p1 }
   0xb   :  { %p169_p4 = pnand %p168_p3, %p162_p0 }
  0x7e   :  { %v34_v10 = vpop.permute.xlu1 %33  ;;  %v28_v11 = vpop.permute.xlu0 %27 }
  0x7f   :  { %vm29_vm1 = vcmp.eq.s32.totalorder %v24_v9, %v28_v11 }
  0x80   :  { %v36_v14 = vsel %vm29_vm1, %v34_v10, 0.0 }
  0x82   :  { %v46_v12 = vpop.permute.xlu1 %45  ;;  %v40_v13 = vpop.permute.xlu0 %39 }
  0x83   :  { %vm41_vm2 = vcmp.eq.s32.totalorder %v24_v9, %v40_v13 }
  0x84   :  { %v48_v15 = vsel %vm41_vm2, %v46_v12, 0.0 }
  0x85   :  { %v49_v16 = vadd.f32 %v48_v15, %v36_v14 }
  0x87   :  { %153 = vmatmul.mubr.msk.f32.vlgmr.msra.gmra.mxu0 %vm54_vm3, %v49_v16 }
 0x147   :  { %v124_v17 = vpop.f32.mrf.mxu0 }
 0x148   :  { %128 = vst [vmem:[#allocation4] sm:$0xff] %v124_v17 }
 0x149   :  { %v154_v18 = vpop.f32.mrf.mxu0 }
 0x14a   :  { %172 = shalt.err (!%p169_p4)
}
 0x14b   :  { %138 = dma.vmem_to_hbm [thread:$0]  %s136_s2, 128, %s249_s6, [#allocation5]  }
 0x14c   :  { %181 = dma.done.wait [#allocation5], 128  }
 0x14d   :  { %182 = vsyncadd [#allocation5], 4294967168 }
 0x14e   :  { %142 = vsyncpa [#allocation5], 1 }

</bundles_post_ra>
